<compile_context>
chip_gen: v5e
topology: v5e:2x2
jax: 0.10.0
libtpu: 0.0.40
codegen_flags: <defaults>
</compile_context>

<pallas_src>
import math

import jax
import jax.numpy as jnp
from jax.experimental import pallas as pl
from jax.experimental.pallas import tpu as pltpu

LANE = 128


def _round_up(x, m):
    return ((x + m - 1) // m) * m


# ----------------------------------------------------------------------------
# Kernel: fused split-K linear1 -> relu -> linear2 -> relu -> padded head
# ----------------------------------------------------------------------------
def expert_kernel(s_ref, a_ref, w1s_ref, w1a_ref, b1_ref, w2_ref, b2_ref,
                  w3_ref, b3_ref, o_ref):
    # Layer 1 without a lane-axis concat: sum of two partial matmuls.
    h1 = (jnp.dot(s_ref[...], w1s_ref[...], preferred_element_type=jnp.float32)
          + jnp.dot(a_ref[...], w1a_ref[...], preferred_element_type=jnp.float32)
          + b1_ref[...])
    h1 = jnp.maximum(h1, 0.0)

    # Layer 2: (TB, 32) @ (32, 16) + (1, 16)
    h2 = jnp.dot(h1, w2_ref[...], preferred_element_type=jnp.float32) + b2_ref[...]
    h2 = jnp.maximum(h2, 0.0)

    # Head, padded to 128 output lanes so the store is lane-dense (unmasked).
    out = jnp.dot(h2, w3_ref[...], preferred_element_type=jnp.float32) + b3_ref[...]
    o_ref[...] = out.astype(o_ref.dtype)


# ----------------------------------------------------------------------------
# Wrapper
# ----------------------------------------------------------------------------
def prepare_expert_params(params, state_size):
    """Split W1 into state/action halves and pad the head to 128 lanes."""
    w1, b1, w2, b2, w3, b3 = params
    w1_s = w1[:state_size]          # (state, 32)
    w1_a = w1[state_size:]          # (action, 32)
    out_dim = w3.shape[1]
    out_pad = _round_up(out_dim, LANE)
    w3p = jnp.pad(w3, ((0, 0), (0, out_pad - out_dim)))   # (16, 128)
    b3p = jnp.pad(b3, ((0, 0), (0, out_pad - out_dim)))   # (1, 128)
    return (w1_s, w1_a, b1, w2, b2, w3p, b3p)


def expert_forward(state, action, prepared, out_dim, *, block_batch=1024):
    """Batched forward.  `block_batch` is the batch tile (sweep 1024-8192 for
    large workloads); small batches are padded up to one tile."""
    w1_s, w1_a, b1, w2, b2, w3p, b3p = prepared
    B, state_size = state.shape
    action_size = action.shape[1]
    out_pad = w3p.shape[1]

    # Batch tile: at least 8 (sublane multiple), at most block_batch.
    TB = min(block_batch, _round_up(B, 8))
    Bp = _round_up(B, TB)
    if Bp != B:
        state = jnp.pad(state, ((0, Bp - B), (0, 0)))
        action = jnp.pad(action, ((0, Bp - B), (0, 0)))

    batch_map = lambda i: (i, 0)   # streamed over the batch grid
    const_map = lambda i: (0, 0)   # weights/biases resident across all steps

    out = pl.pallas_call(
        expert_kernel,
        out_shape=jax.ShapeDtypeStruct((Bp, out_pad), jnp.float32),
        grid=(pl.cdiv(Bp, TB),),
        in_specs=[
            pl.BlockSpec((TB, state_size), batch_map),
            pl.BlockSpec((TB, action_size), batch_map),
            pl.BlockSpec(w1_s.shape, const_map),
            pl.BlockSpec(w1_a.shape, const_map),
            pl.BlockSpec(b1.shape, const_map),
            pl.BlockSpec(w2.shape, const_map),
            pl.BlockSpec(b2.shape, const_map),
            pl.BlockSpec(w3p.shape, const_map),
            pl.BlockSpec(b3p.shape, const_map),
        ],
        out_specs=pl.BlockSpec((TB, out_pad), batch_map),
        compiler_params=pltpu.CompilerParams(
            dimension_semantics=("parallel",)),
    )(state, action, w1_s, w1_a, b1, w2, b2, w3p, b3p)

    return out[:B, :out_dim]


# ----------------------------------------------------------------------------
# Deterministic parameter initialization (mirrors the PyTorch __init__)
# ----------------------------------------------------------------------------
def init_expert_params(key, state_size, action_size):
    sm = state_size + action_size
    sizes = [sm, 32, 16, state_size]
    keys = jax.random.split(key, 6)

    def fanin_uniform(k, fan_in, shape):
        bound = 1.0 / math.sqrt(fan_in)
        return jax.random.uniform(k, shape, jnp.float32, -bound, bound)

    # Weights stored as (in, out) = transpose of nn.Linear's (out, in).
    # fanin_init on linear1/linear2 weights; uniform(-3e-3, 3e-3) on head.
    w1 = fanin_uniform(keys[0], sizes[0], (sizes[0], sizes[1]))
    w2 = fanin_uniform(keys[1], sizes[1], (sizes[1], sizes[2]))
    w3 = jax.random.uniform(keys[2], (sizes[2], sizes[3]), jnp.float32,
                            -3 * 0.001, 3 * 0.001)
    # Biases follow nn.Linear's default: uniform(-1/sqrt(fan_in), 1/sqrt(fan_in)).
    # (The PyTorch module only re-initializes the weights, not the biases.)
    b1 = fanin_uniform(keys[3], sizes[0], (1, sizes[1]))
    b2 = fanin_uniform(keys[4], sizes[1], (1, sizes[2]))
    b3 = fanin_uniform(keys[5], sizes[2], (1, sizes[3]))
    return (w1, b1, w2, b2, w3, b3)


# Pure-JAX reference for correctness checking.
def expert_ref(state, action, params):
    w1, b1, w2, b2, w3, b3 = params
    x = jnp.concatenate([state, action], axis=1)
    x = jnp.maximum(x @ w1 + b1, 0.0)
    x = jnp.maximum(x @ w2 + b2, 0.0)
    return x @ w3 + b3


if __name__ == "__main__":
    state_size = 4
    action_size = 2

    key = jax.random.PRNGKey(0)
    k_state, k_action, k_params = jax.random.split(key, 3)

    params = init_expert_params(k_params, state_size, action_size)
    prepared = prepare_expert_params(params, state_size)

    # Case 1: batch that forms a multi-step pipelined grid (TB=16 -> 4 steps).
    batch = 64
    state = jax.random.normal(k_state, (batch, state_size), jnp.float32)
    action = jax.random.normal(k_action, (batch, action_size), jnp.float32)

    out = expert_forward(state, action, prepared, state_size, block_batch=16)
    out = jax.block_until_ready(out)
    ref = expert_ref(state, action, params)
    assert out.shape == (batch, state_size)
    assert jnp.allclose(out, ref, atol=1e-5, rtol=1e-5), "mismatch vs reference (B=64)"

    # Case 2: tiny module-style batch (B=2); exercises batch-pad path.
    out2 = expert_forward(state[:2], action[:2], prepared, state_size)
    out2 = jax.block_until_ready(out2)
    ref2 = expert_ref(state[:2], action[:2], params)
    assert out2.shape == (2, state_size)
    assert jnp.allclose(out2, ref2, atol=1e-5, rtol=1e-5), "mismatch vs reference (B=2)"

    print("KERNEL_OK")
</pallas_src>

<mosaic_0001>
module attributes {stable_mosaic.version = 11 : i64} {
  func.func @expert_kernel(%arg0: i32, %arg1: memref<16x4xf32, #tpu.memory_space<vmem>>, %arg2: memref<16x2xf32, #tpu.memory_space<vmem>>, %arg3: memref<4x32xf32, #tpu.memory_space<vmem>>, %arg4: memref<2x32xf32, #tpu.memory_space<vmem>>, %arg5: memref<1x32xf32, #tpu.memory_space<vmem>>, %arg6: memref<32x16xf32, #tpu.memory_space<vmem>>, %arg7: memref<1x16xf32, #tpu.memory_space<vmem>>, %arg8: memref<16x128xf32, #tpu.memory_space<vmem>>, %arg9: memref<1x128xf32, #tpu.memory_space<vmem>>, %arg10: memref<16x128xf32, #tpu.memory_space<vmem>>) attributes {dimension_semantics = [#tpu.dimension_semantics<parallel>], iteration_bounds = array<i64: 4>, scalar_prefetch = 0 : i64, scratch_operands = 0 : i64, tpu.core_type = #tpu.core_type<tc>, window_params = [{transform_indices = @transform_0, window_bounds = array<i64: 16, 4>}, {transform_indices = @transform_1, window_bounds = array<i64: 16, 2>}, {pipeline_mode = #tpu.pipeline_mode<synchronous>, transform_indices = @transform_2, window_bounds = array<i64: 4, 32>}, {pipeline_mode = #tpu.pipeline_mode<synchronous>, transform_indices = @transform_3, window_bounds = array<i64: 2, 32>}, {pipeline_mode = #tpu.pipeline_mode<synchronous>, transform_indices = @transform_4, window_bounds = array<i64: 1, 32>}, {pipeline_mode = #tpu.pipeline_mode<synchronous>, transform_indices = @transform_5, window_bounds = array<i64: 32, 16>}, {pipeline_mode = #tpu.pipeline_mode<synchronous>, transform_indices = @transform_6, window_bounds = array<i64: 1, 16>}, {pipeline_mode = #tpu.pipeline_mode<synchronous>, transform_indices = @transform_7, window_bounds = array<i64: 16, 128>}, {pipeline_mode = #tpu.pipeline_mode<synchronous>, transform_indices = @transform_8, window_bounds = array<i64: 1, 128>}, {transform_indices = @transform_9, window_bounds = array<i64: 16, 128>}]} {
    %c0 = arith.constant 0 : index
    %c0_0 = arith.constant 0 : index
    %0 = vector.load %arg1[%c0, %c0_0] : memref<16x4xf32, #tpu.memory_space<vmem>>, vector<16x4xf32>
    %c0_1 = arith.constant 0 : index
    %c0_2 = arith.constant 0 : index
    %1 = vector.load %arg3[%c0_1, %c0_2] : memref<4x32xf32, #tpu.memory_space<vmem>>, vector<4x32xf32>
    %cst = arith.constant dense<0.000000e+00> : vector<16x32xf32>
    %2 = tpu.matmul %0, %1, %cst {dimension_numbers = #tpu.dot_dimension_numbers<[1], [0], [0], [1], [0, 0, 1, 1], [], []>} : vector<16x4xf32>, vector<4x32xf32>, vector<16x32xf32> -> vector<16x32xf32>
    %c0_3 = arith.constant 0 : index
    %c0_4 = arith.constant 0 : index
    %3 = vector.load %arg2[%c0_3, %c0_4] : memref<16x2xf32, #tpu.memory_space<vmem>>, vector<16x2xf32>
    %c0_5 = arith.constant 0 : index
    %c0_6 = arith.constant 0 : index
    %4 = vector.load %arg4[%c0_5, %c0_6] : memref<2x32xf32, #tpu.memory_space<vmem>>, vector<2x32xf32>
    %cst_7 = arith.constant dense<0.000000e+00> : vector<16x32xf32>
    %5 = tpu.matmul %3, %4, %cst_7 {dimension_numbers = #tpu.dot_dimension_numbers<[1], [0], [0], [1], [0, 0, 1, 1], [], []>} : vector<16x2xf32>, vector<2x32xf32>, vector<16x32xf32> -> vector<16x32xf32>
    %6 = arith.addf %2, %5 : vector<16x32xf32>
    %c0_8 = arith.constant 0 : index
    %c0_9 = arith.constant 0 : index
    %7 = vector.load %arg5[%c0_8, %c0_9] : memref<1x32xf32, #tpu.memory_space<vmem>>, vector<1x32xf32>
    %8 = vector.broadcast %7 : vector<1x32xf32> to vector<16x32xf32>
    %9 = arith.addf %6, %8 : vector<16x32xf32>
    %cst_10 = arith.constant 0.000000e+00 : f32
    %10 = vector.broadcast %cst_10 : f32 to vector<16x32xf32>
    %11 = arith.maximumf %9, %10 : vector<16x32xf32>
    %c0_11 = arith.constant 0 : index
    %c0_12 = arith.constant 0 : index
    %12 = vector.load %arg6[%c0_11, %c0_12] : memref<32x16xf32, #tpu.memory_space<vmem>>, vector<32x16xf32>
    %cst_13 = arith.constant dense<0.000000e+00> : vector<16x16xf32>
    %13 = tpu.matmul %11, %12, %cst_13 {dimension_numbers = #tpu.dot_dimension_numbers<[1], [0], [0], [1], [0, 0, 1, 1], [], []>} : vector<16x32xf32>, vector<32x16xf32>, vector<16x16xf32> -> vector<16x16xf32>
    %c0_14 = arith.constant 0 : index
    %c0_15 = arith.constant 0 : index
    %14 = vector.load %arg7[%c0_14, %c0_15] : memref<1x16xf32, #tpu.memory_space<vmem>>, vector<1x16xf32>
    %15 = vector.broadcast %14 : vector<1x16xf32> to vector<16x16xf32>
    %16 = arith.addf %13, %15 : vector<16x16xf32>
    %cst_16 = arith.constant 0.000000e+00 : f32
    %17 = vector.broadcast %cst_16 : f32 to vector<16x16xf32>
    %18 = arith.maximumf %16, %17 : vector<16x16xf32>
    %c0_17 = arith.constant 0 : index
    %c0_18 = arith.constant 0 : index
    %19 = vector.load %arg8[%c0_17, %c0_18] : memref<16x128xf32, #tpu.memory_space<vmem>>, vector<16x128xf32>
    %cst_19 = arith.constant dense<0.000000e+00> : vector<16x128xf32>
    %20 = tpu.matmul %18, %19, %cst_19 {dimension_numbers = #tpu.dot_dimension_numbers<[1], [0], [0], [1], [0, 0, 1, 1], [], []>} : vector<16x16xf32>, vector<16x128xf32>, vector<16x128xf32> -> vector<16x128xf32>
    %c0_20 = arith.constant 0 : index
    %c0_21 = arith.constant 0 : index
    %21 = vector.load %arg9[%c0_20, %c0_21] : memref<1x128xf32, #tpu.memory_space<vmem>>, vector<1x128xf32>
    %22 = vector.broadcast %21 : vector<1x128xf32> to vector<16x128xf32>
    %23 = arith.addf %20, %22 : vector<16x128xf32>
    %c0_22 = arith.constant 0 : index
    %c0_23 = arith.constant 0 : index
    %24 = vector.load %arg10[%c0_22, %c0_23] : memref<16x128xf32, #tpu.memory_space<vmem>>, vector<16x128xf32>
    tpu.vector_store %arg10[%c0_22, %c0_23], %23 {strides = array<i32>} : memref<16x128xf32, #tpu.memory_space<vmem>>, vector<16x128xf32>,
    return
  }
  func.func @transform_0(%arg0: i32) -> (i32, i32) {
    %c0_i32 = arith.constant 0 : i32
    %c0_i32_0 = arith.constant 0 : i32
    return %arg0, %c0_i32 : i32, i32
  }
  func.func @transform_1(%arg0: i32) -> (i32, i32) {
    %c0_i32 = arith.constant 0 : i32
    %c0_i32_0 = arith.constant 0 : i32
    return %arg0, %c0_i32 : i32, i32
  }
  func.func @transform_2(%arg0: i32) -> (i32, i32) {
    %c0_i32 = arith.constant 0 : i32
    %c0_i32_0 = arith.constant 0 : i32
    %c0_i32_1 = arith.constant 0 : i32
    return %c0_i32, %c0_i32_0 : i32, i32
  }
  func.func @transform_3(%arg0: i32) -> (i32, i32) {
    %c0_i32 = arith.constant 0 : i32
    %c0_i32_0 = arith.constant 0 : i32
    %c0_i32_1 = arith.constant 0 : i32
    return %c0_i32, %c0_i32_0 : i32, i32
  }
  func.func @transform_4(%arg0: i32) -> (i32, i32) {
    %c0_i32 = arith.constant 0 : i32
    %c0_i32_0 = arith.constant 0 : i32
    %c0_i32_1 = arith.constant 0 : i32
    return %c0_i32, %c0_i32_0 : i32, i32
  }
  func.func @transform_5(%arg0: i32) -> (i32, i32) {
    %c0_i32 = arith.constant 0 : i32
    %c0_i32_0 = arith.constant 0 : i32
    %c0_i32_1 = arith.constant 0 : i32
    return %c0_i32, %c0_i32_0 : i32, i32
  }
  func.func @transform_6(%arg0: i32) -> (i32, i32) {
    %c0_i32 = arith.constant 0 : i32
    %c0_i32_0 = arith.constant 0 : i32
    %c0_i32_1 = arith.constant 0 : i32
    return %c0_i32, %c0_i32_0 : i32, i32
  }
  func.func @transform_7(%arg0: i32) -> (i32, i32) {
    %c0_i32 = arith.constant 0 : i32
    %c0_i32_0 = arith.constant 0 : i32
    %c0_i32_1 = arith.constant 0 : i32
    return %c0_i32, %c0_i32_0 : i32, i32
  }
  func.func @transform_8(%arg0: i32) -> (i32, i32) {
    %c0_i32 = arith.constant 0 : i32
    %c0_i32_0 = arith.constant 0 : i32
    %c0_i32_1 = arith.constant 0 : i32
    return %c0_i32, %c0_i32_0 : i32, i32
  }
  func.func @transform_9(%arg0: i32) -> (i32, i32) {
    %c0_i32 = arith.constant 0 : i32
    %c0_i32_0 = arith.constant 0 : i32
    return %arg0, %c0_i32 : i32, i32
  }
}

</mosaic_0001>

<bundles_post_ra>
// kernel: tpu_custom_call.1
= control target key start
LH: loop header
LB: loop body
LE: loop exit
PB: predicated region body
PF: predicated region fallthrough
CT: control target
= control target key end

     0   :  { %14 = vsyncpa [#allocation3], 0  ;;  %s911_s0 = inlined_call_operand.vmem [shape: f32[64,4], index: 0, kind: input, shape index: {}]   ;;  %s912_s1 = inlined_call_operand.vmem [shape: f32[64,2], index: 1, kind: input, shape index: {}]   ;;  %s913_s2 = inlined_call_operand.vmem [shape: f32[4,32], index: 2, kind: input, shape index: {}]   ;;  %s914_s3 = inlined_call_operand.vmem [shape: f32[2,32], index: 3, kind: input, shape index: {}]   ;;  %s915_s4 = inlined_call_operand.vmem [shape: f32[1,32], index: 4, kind: input, shape index: {}]   ;;  %s916_s5 = inlined_call_operand.vmem [shape: f32[32,16], index: 5, kind: input, shape index: {}]   ;;  %s917_s6 = inlined_call_operand.vmem [shape: f32[1,16], index: 6, kind: input, shape index: {}]   ;;  %s918_s7 = inlined_call_operand.vmem [shape: f32[16,128], index: 7, kind: input, shape index: {}]   ;;  %s919_s8 = inlined_call_operand.vmem [shape: f32[1,128], index: 8, kind: input, shape index: {}]   ;;  %s920_s9 = inlined_call_operand.hbm [shape: f32[64,128], index: 9, kind: output, shape index: {}]  }
   0x1   :  { %16 = vsyncpa [#allocation3 + $0x1], 0  ;;  %s791_s30 = smov 0   ;;  %s793_s10 = smov 0  }
   0x2   :  { %s795_s11 = smov 0   ;;  %s797_s12 = smov 0  }
   0x3 LB: > { %s812_s13 = sadd.s32 4294967295, %s737_s12   ;;  %s606_s14 = sadd.s32 4294967294, %s737_s12   ;;  %s737_s12 = sphi %s797_s12, %s926_s12   ;;  %s733_s11 = sphi %s795_s11, %s925_s11   ;;  %s729_s10 = sphi %s793_s10, %s924_s10   ;;  %s725_s30 = sphi %s791_s30, %s923_s30  }
   0x4   : > { %s816_s15 = sadd.s32 1, %s737_s12   ;;  %s228_s16 = sadd.s32 1, %s733_s11 }
   0x5   : > { %s225_s17 = ssub.s32 %s737_s12, %s816_s15  ;;  %p238_p0 = scmp.ne.s32.totalorder %s733_s11, %s729_s10 }
   0x6   : > { %p226_p1 = scmp.eq.s32.totalorder %s225_s17, 0  ;;  %p239_p2 = scmp.eq.s32.totalorder %s812_s13, 3 }
   0x7   : > { %p244_p3 = scmp.ne.s32.totalorder %s729_s10, %s725_s30  ;;  %p245_p4 = scmp.eq.s32.totalorder %s606_s14, 3 }
   0x8   : > { %s827_s18 = scalar_select %p226_p1, %s733_s11, %s228_s16  }
   0x9   : > { %p829_p5 = por %p239_p2, %p238_p0  ;;  %p833_p6 = por %p245_p4, %p244_p3 }
   0xa   : > { %p609_p7 = scmp.ge.s32.totalorder %s737_s12, 1  ;;  %p302_p8 = scmp.lt.s32.totalorder %s737_s12, 5 }
   0xc   : > { %p303_p9 = pnand %p609_p7, %p302_p8 }
   0xd   : > { %s611_s25 = sshll.u32 (!%p303_p9), %s812_s13, 1 }
   0xe   : > { %306 = sbr.rel (%p303_p9) target bundleno = 438 (0x1b6), region = 56  ;;  %p344_p10 = scmp.lt.s32.totalorder (!%p303_p9), %s611_s25, 7 }
  0x13   : > { %v361_v0 = vld [vmem:[%s914_s3] sm:$0x3]  ;;  %vm369_vm0 = vcmask 1041408   ;;  %vm403_vm1 = vcmask 1043456   ;;  %s928_s25 = smov (!%p344_p10, %s611_s25), 7  ;;  %vm362_vm2 = vcmask 15360  }
  0x14   : > { %v358_v1 = vld [vmem:[%s913_s2] sm:$0xf]  ;;  %615 = vmatpush.msk.msra.mxu0 %vm369_vm0, %v361_v0  ;;  %s612_s26 = sshll.u32 %s928_s25, 3  ;;  %vm396_vm3 = vcmask 31744   ;;  %v441_v6 = vld [vmem:[%s916_s5 + $0x18] sm:$0xff]  ;;  %v440_v7 = vld [vmem:[%s916_s5 + $0x10] sm:$0xff] }
  0x15   : > { %618 = vmatpush.msk.msra.mxu1 %vm403_vm1, %v358_v1  ;;  %s353_s29 = scalar_lea.vmem %s912_s1, %s612_s26  ;;  %s347_s17 = scalar_lea.vmem %s911_s0, %s612_s26  ;;  %465 = vmatpush.msra.mxu2 %v441_v6  ;;  %v439_v8 = vld [vmem:[%s916_s5 + $0x8] sm:$0xff]  ;;  %v438_v9 = vld [vmem:[%s916_s5] sm:$0xff]  ;;  %vm446_vm4 = vcmask 261120   ;;  %vm484_vm5 = vcmask 130048  }
  0x16   : > { %v359_v2 = vld [vmem:[%s353_s29] sm:$0xff]  ;;  %v360_v4 = vld [vmem:[%s353_s29 + $0x8] sm:$0xff]  ;;  %s340_s25 = sand.u32 1, %s729_s10   ;;  %s630_s29 = sshll.u32 %s812_s13, 4 }
  0x17   : > { %v356_v3 = vld [vmem:[%s347_s17] sm:$0xff]  ;;  %616 = vmatmul.msk.f32.vlgmr.msra.gmra.mxu0 %vm362_vm2, %v359_v2  ;;  %v357_v5 = vld [vmem:[%s347_s17 + $0x8] sm:$0xff]  ;;  %466 = vmatpush.msra.mxu2 %v440_v7  ;;  %s610_s26 = sshll.u32 %s340_s25, 4  ;;  %s528_s17 = scalar_lea.hbm %s920_s9, %s630_s29 }
  0x18   : > { %619 = vmatmul.msk.f32.vlgmr.msra.gmra.mxu1 %vm396_vm3, %v356_v3  ;;  %v672_v10 = vld [vmem:[%s915_s4] ss:$0 sm:$0xff]  ;;  %v479_v21 = vld [vmem:[%s918_s7 + $0x8] sm:$0xff]  ;;  %s342_s21 = scalar_lea.vmem [#allocation2], %s610_s26  ;;  %s531_s23 = sshll.u32 %s528_s17, 4  ;;  %s532_s23 = int_to_ptr.hbm [resolvable:$true] %s531_s23 }
  0x19   : > { %467 = vmatpush.msra.mxu2 %v439_v8  ;;  %505 = vmatpush.msra.mxu3 %v479_v21  ;;  %v478_v22 = vld [vmem:[%s918_s7] sm:$0xff]  ;;  %s529_s22 = sshll.u32 %s342_s21, 4  ;;  %s517_s24 = scalar_lea.sflag [#allocation3], %s340_s25  ;;  %s530_s22 = int_to_ptr.vmem [resolvable:$true] %s529_s22 }
  0x1a   : > { %v673_v23 = vld [vmem:[%s917_s6] ss:$0 sm:$0xff]  ;;  %s689_s27 = sshra.s32 %s532_s23, 4  ;;  %s695_s26 = scalar_lea.hbm %s920_s9, 64  ;;  %s690_s27 = int_to_ptr.hbm [resolvable:$true] %s689_s27 }
  0x1b   : > { %468 = vmatpush.msra.mxu2 %v438_v9  ;;  %506 = vmatpush.msra.mxu3 %v478_v22  ;;  %v674_v30 = vld [vmem:[%s919_s8] ss:$0 sm:$0xff]  ;;  %s691_s13 = scalar_lea.hbm %s690_s27, 16  ;;  %p696_p0 = scmp.lt.s32.totalorder %s690_s27, %s920_s9 }
  0x1c   : > { %p692_p11 = scmp.ne.s32.totalorder %s690_s27, %s691_s13  ;;  %p697_p1 = scmp.lt.s32.totalorder %s695_s26, %s691_s13 }
  0x1e   : > { %p693_p12 = pnand %p692_p11, %p829_p5  ;;  %p698_p2 = por %p697_p1, %p696_p0 }
  0x1f   : > { %617 = vmatmul.msk.f32.gmra.mxu0 %vm362_vm2, %v360_v4 }
  0x20   : > { %620 = vmatmul.msk.f32.gmra.mxu1 %vm396_vm3, %v357_v5  ;;  %p694_p13 = pneg %p693_p12 }
  0x22   : > { %p699_p3 = pnand %p698_p2, %p694_p13 }
  0x94   : > { %v390_v11 = vpop.f32.mrf.mxu0 }
  0x95   : > { %v424_v12 = vpop.f32.mrf.mxu1 }
  0x96   : > { %v425_v13 = vadd.f32 %v424_v12, %v390_v11 }
  0x98   : > { %v434_v14 = vadd.f32 %v672_v10, %v425_v13 }
  0x9a   : > { %v436_v15 = vmax.f32 %v434_v14, 0.0 }
  0x9c   : > { %621 = vmatmul.msk.f32.vlgmr.msra.gmra.mxu2 %vm446_vm4, %v436_v15  ;;  %v393_v16 = vpop.f32.mrf.mxu0 }
  0x9d   : > { %v427_v17 = vpop.f32.mrf.mxu1 }
  0x9e   : > { %v428_v18 = vadd.f32 %v427_v17, %v393_v16 }
  0xa0   : > { %v435_v19 = vadd.f32 %v672_v10, %v428_v18 }
  0xa2   : > { %v437_v20 = vmax.f32 %v435_v19, 0.0 }
  0xa4   : > { %622 = vmatmul.msk.f32.gmra.mxu2 %vm446_vm4, %v437_v20 }
 0x11f   : > { %v470_v24 = vpop.f32.mrf.mxu2 }
 0x120   : > { %v471_v25 = vadd.f32 %v673_v23, %v470_v24 }
 0x122   : > { %v476_v26 = vmax.f32 %v471_v25, 0.0 }
 0x124   : > { %623 = vmatmul.msk.f32.vlgmr.msra.gmra.mxu3 %vm484_vm5, %v476_v26 }
 0x127   : > { %v473_v27 = vpop.f32.mrf.mxu2 }
 0x128   : > { %v474_v28 = vadd.f32 %v673_v23, %v473_v27 }
 0x12a   : > { %v477_v29 = vmax.f32 %v474_v28, 0.0 }
 0x12c   : > { %624 = vmatmul.msk.f32.gmra.mxu3 %vm484_vm5, %v477_v29 }
 0x1a7   : > { %v508_v31 = vpop.f32.mrf.mxu3 }
 0x1a8   : > { %v509_v32 = vadd.f32 %v674_v30, %v508_v31 }
 0x1aa   : > { %514 = vst [vmem:[%s342_s21] sm:$0xff] %v509_v32 }
 0x1af   : > { %v511_v33 = vpop.f32.mrf.mxu3 }
 0x1b0   : > { %v512_v34 = vadd.f32 %v674_v30, %v511_v33 }
 0x1b2   : > { %515 = vst [vmem:[%s342_s21 + $0x8] sm:$0xff] %v512_v34 }
 0x1b3   : > { %702 = shalt.err (!%p699_p3)
}
 0x1b4   : > { %s739_s25 = smov 128   ;;  %s740_s17 = smov 8  }
 0x1b5   : > { %631 = dma.vmem_to_hbm [thread:$0]  (%p829_p5), %s530_s22, 256, %s532_s23, %s517_s24, %s739_s25, %s739_s25, %s740_s17  }
 0x1b6 PF: > { %p637_p4 = scmp.ge.s32.totalorder %s737_s12, 2  ;;  %s546_s21 = sand.u32 1, %s725_s30  }
 0x1b7   : > { %s547_s28 = scalar_lea.sflag [#allocation3], %s546_s21 }
 0x1b8   : > { %p634_p7 = pnand %p637_p4, %p833_p6 }
 0x1ba   : > { %p635_p8 = pneg %p634_p7 }
 0x1bc   : > { %720 = dma.done.wait (%p635_p8), %s547_s28, 256  }
 0x1bd   : > { %722 = vsyncadd (%p635_p8), %s547_s28, 4294967040  ;;  %p19_p9 = scmp.ge.s32.totalorder %s816_s15, 6   ;;  %s923_s30 = smov %s729_s10 }
 0x1be   : > { %s924_s10 = smov %s733_s11  ;;  %s925_s11 = smov %s827_s18 }
 0x1bf   : > { %s926_s12 = smov %s816_s15  ;;  %21 = sbr.rel (!%p19_p9) target bundleno = 3 (0x3), region = 94 }
 0x1c4   :  { %553 = vsyncpa [#allocation3], 1 }
 0x1c5   :  { %555 = vsyncpa [#allocation3 + $0x1], 1 }

</bundles_post_ra>
